<compile_context>
chip_gen: v7x
topology: tpu7x:2x2x1
jax: 0.10.0
libtpu: 0.0.40
codegen_flags: <defaults>
</compile_context>

<pallas_src>
import functools

import jax
import jax.numpy as jnp
from jax.experimental import pallas as pl
from jax.experimental.pallas import tpu as pltpu

_LN_EPS = 1e-5


def _layer_norm(x, gamma, beta):
    mu = jnp.mean(x, axis=-1, keepdims=True)
    var = jnp.mean(jnp.square(x - mu), axis=-1, keepdims=True)
    return (x - mu) * jax.lax.rsqrt(var + _LN_EPS) * gamma + beta


def transformer_layer_rt_kernel(
        x_ref, wqkv_ref, bqkv_ref,
        ln1_g_ref, ln1_b_ref,
        w1_ref, b1_ref, w2_ref, b2_ref,
        ln2_g_ref, ln2_b_ref,
        wt2_ref, bt2_ref,
        out_ref, out_t_ref,
        *, n_heads, matmul_dtype):
    d_attn = wqkv_ref.shape[1] // 3
    d_k = d_attn // n_heads
    seq_len = x_ref.shape[0]

    def mm(a, b):
        return jnp.dot(a.astype(matmul_dtype), b.astype(matmul_dtype),
                       preferred_element_type=jnp.float32)

    x = x_ref[...].astype(jnp.float32)                        # (L, D)

    # Fused Q|K|V projection (one MXU push); 1/sqrt(d_k) is baked into Q cols.
    qkv = mm(x, wqkv_ref[...]) + bqkv_ref[...]                # (L, 3*d_attn)

    # Heads via ONE reshape + batched contractions (no per-head Python loops).
    q = qkv[:, :d_attn].reshape(seq_len, n_heads, d_k)
    k = qkv[:, d_attn:2 * d_attn].reshape(seq_len, n_heads, d_k)
    v = qkv[:, 2 * d_attn:].reshape(seq_len, n_heads, d_k)

    # TODO(synk): attention-mask path (masked_fill(-inf) + NaN->0) not
    # implemented; the reference forward is exercised with mask=None.
    scores = jnp.einsum('ihd,jhd->hij',
                        q.astype(matmul_dtype), k.astype(matmul_dtype),
                        preferred_element_type=jnp.float32)   # (H, L, L)
    # Row-wise max subtraction == reference's global-max form (shift-invariant).
    m = jnp.max(scores, axis=-1, keepdims=True)
    e = jnp.exp(scores - m)
    probs = e * pl.reciprocal(jnp.sum(e, axis=-1, keepdims=True), approx=True)

    ctx = jnp.einsum('hij,jhd->ihd',
                     probs.astype(matmul_dtype), v.astype(matmul_dtype),
                     preferred_element_type=jnp.float32)      # (L, H, d_k)
    attn = ctx.reshape(seq_len, d_attn)                       # merged heads

    # residual + layer_norm1 (dropout = identity in eval / p=0)
    context = _layer_norm(attn + x, ln1_g_ref[...], ln1_b_ref[...])

    # feed-forward + residual + layer_norm2
    h1 = jnp.maximum(mm(context, w1_ref[...]) + b1_ref[...], 0.0)
    ff = mm(h1, w2_ref[...]) + b2_ref[...]
    out = _layer_norm(ff + context, ln2_g_ref[...], ln2_b_ref[...])

    # Reference quirk: linear_t1(context).relu() is immediately overwritten and
    # layer_norm2(context) only feeds that dead expression -> both skipped.
    # wt2/bt2 are pre-padded lane-dense (pad bias = -1e9 => ~0 probability).
    logits_t = mm(out, wt2_ref[...]) + bt2_ref[...]
    mt = jnp.max(logits_t, axis=-1, keepdims=True)
    et = jnp.exp(logits_t - mt)
    out_t = et / jnp.sum(et, axis=-1, keepdims=True)          # exact (output)

    out_ref[...] = out.astype(out_ref.dtype)
    out_t_ref[...] = out_t.astype(out_t_ref.dtype)


def prepare_params(wq, bq, wk, bk, wv, bv, ln1_g, ln1_b,
                   w1, b1, w2, b2, ln2_g, ln2_b, wt2, bt2, *, n_heads):
    """One-time parameter preprocessing (hoisted out of the per-call wrapper)."""
    D, d_attn = wq.shape
    if d_attn % n_heads != 0:
        raise ValueError("attention_d must be divisible by n_heads")
    d_t = wt2.shape[1]
    if wt2.shape[0] != D:
        # Reference-module quirk: linear_t2 (in_features=d_ff) is applied to the
        # d_model-wide `output`, so the layer only works when d_ff == d_model.
        raise ValueError(
            f"linear_t2 in_features ({wt2.shape[0]}) must equal d_model ({D})")

    d_k = d_attn // n_heads
    scale = 1.0 / (d_k ** 0.5)
    # Fuse Q|K|V into one weight and bake the softmax scale into the Q columns.
    wqkv = jnp.concatenate([wq * scale, wk, wv], axis=1)      # (D, 3*d_attn)
    bqkv = jnp.concatenate([bq * scale, bk, bv], axis=1)      # (1, 3*d_attn)

    lane = 128
    dt_pad = ((d_t + lane - 1) // lane) * lane
    pad = dt_pad - d_t
    wt2_p = jnp.pad(wt2, ((0, 0), (0, pad)))                  # zero cols
    bt2_p = jnp.pad(bt2, ((0, 0), (0, pad)), constant_values=-1e9)

    params = (wqkv, bqkv, ln1_g, ln1_b, w1, b1, w2, b2,
              ln2_g, ln2_b, wt2_p, bt2_p)
    return params, d_t


def transformer_layer_rt(seq, params, d_t, *, n_heads,
                         matmul_dtype=jnp.float32):
    B, L, D = seq.shape
    (wqkv, bqkv, ln1_g, ln1_b, w1, b1, w2, b2,
     ln2_g, ln2_b, wt2_p, bt2_p) = params
    d_attn = wqkv.shape[1] // 3
    d_k = d_attn // n_heads
    d_ff = w1.shape[1]
    dt_pad = wt2_p.shape[1]

    x2d = seq.reshape(B * L, D)

    kernel = functools.partial(transformer_layer_rt_kernel,
                               n_heads=n_heads, matmul_dtype=matmul_dtype)

    # x / out / out_t tiled per batch row-block; weights resident (constant map).
    in_specs = [pl.BlockSpec((L, D), lambda b: (b, 0))]
    in_specs += [pl.BlockSpec(p.shape, lambda b: (0, 0)) for p in params]
    out_specs = (pl.BlockSpec((L, D), lambda b: (b, 0)),
                 pl.BlockSpec((L, dt_pad), lambda b: (b, 0)))

    # Cost estimate for the XLA scheduler.
    flops = 2 * B * L * D * (3 * d_attn)                      # QKV projection
    flops += 2 * B * n_heads * L * L * d_k * 2                # scores + ctx
    flops += 2 * B * L * (D * d_ff + d_ff * D)                # FFN
    flops += 2 * B * L * D * dt_pad                           # head
    transcendentals = B * n_heads * L * L + B * L * dt_pad    # exp
    itemsize = seq.dtype.itemsize
    weight_bytes = sum(int(p.size) * p.dtype.itemsize for p in params)
    bytes_accessed = (int(x2d.size) * itemsize + B * L * (D + dt_pad) * itemsize
                      + weight_bytes)

    # VMEM budget: resident weights + double-buffered row tiles + intermediates.
    tile_io = 4 * L * (D + D + dt_pad)
    inter = 4 * L * (3 * d_attn + d_attn + d_ff) + 2 * 4 * n_heads * L * L
    est = weight_bytes + 2 * tile_io + 2 * inter
    vmem_limit = int(min(max(2 * est, 32 << 20), 64 << 20))

    out2d, out_t_pad = pl.pallas_call(
        kernel,
        grid=(B,),
        in_specs=in_specs,
        out_specs=out_specs,
        out_shape=(jax.ShapeDtypeStruct((B * L, D), seq.dtype),
                   jax.ShapeDtypeStruct((B * L, dt_pad), seq.dtype)),
        compiler_params=pltpu.CompilerParams(
            dimension_semantics=("parallel",),
            vmem_limit_bytes=vmem_limit),
        cost_estimate=pl.CostEstimate(flops=int(flops),
                                      transcendentals=int(transcendentals),
                                      bytes_accessed=int(bytes_accessed)),
    )(x2d, *params)

    out = out2d.reshape(B, L, D)
    out_t = out_t_pad[:, :d_t].reshape(B, L, d_t)
    return out, out_t


if __name__ == "__main__":
    # Small shapes consistent with the module (d_ff == d_model is required by
    # the reference's own linear_t2-on-output quirk).
    B, L = 2, 8
    d_model, d_ff, d_t, n_heads = 32, 32, 16, 4

    key = jax.random.PRNGKey(0)
    keys = jax.random.split(key, 8)

    def lin_init(k, fan_in, fan_out):
        kw, kb = jax.random.split(k)
        bound = 1.0 / (fan_in ** 0.5)
        w = jax.random.uniform(kw, (fan_in, fan_out), jnp.float32, -bound, bound)
        b = jax.random.uniform(kb, (1, fan_out), jnp.float32, -bound, bound)
        return w, b

    wq, bq = lin_init(keys[0], d_model, d_model)
    wk, bk = lin_init(keys[1], d_model, d_model)
    wv, bv = lin_init(keys[2], d_model, d_model)
    ln1_g = jnp.ones((1, d_model), jnp.float32)
    ln1_b = jnp.zeros((1, d_model), jnp.float32)
    w1, b1 = lin_init(keys[3], d_model, d_ff)
    w2, b2 = lin_init(keys[4], d_ff, d_model)
    ln2_g = jnp.ones((1, d_model), jnp.float32)
    ln2_b = jnp.zeros((1, d_model), jnp.float32)
    wt2, bt2 = lin_init(keys[5], d_ff, d_t)

    seq = jax.random.normal(keys[6], (B, L, d_model), jnp.float32)

    # One-time parameter preprocessing (QKV fusion, scale bake, head padding).
    params, d_t_real = prepare_params(
        wq, bq, wk, bk, wv, bv, ln1_g, ln1_b,
        w1, b1, w2, b2, ln2_g, ln2_b, wt2, bt2, n_heads=n_heads)

    # Pure-JAX reference (same math as the PyTorch forward with mask=None).
    def reference(x):
        def ln(y, g, b):
            mu = y.mean(-1, keepdims=True)
            var = ((y - mu) ** 2).mean(-1, keepdims=True)
            return (y - mu) / jnp.sqrt(var + 1e-5) * g + b

        with jax.default_matmul_precision("highest"):
            q = x @ wq + bq
            k = x @ wk + bk
            v = x @ wv + bv
            d_k = d_model // n_heads

            def split(t):
                return t.reshape(B, L, n_heads, d_k).transpose(0, 2, 1, 3)

            qh, kh, vh = split(q), split(k), split(v)
            sc = jnp.einsum("bhqd,bhkd->bhqk", qh, kh) / (d_k ** 0.5)
            sc = jax.nn.softmax(sc - sc.max(), axis=-1)
            attn = jnp.einsum("bhqk,bhkd->bhqd", sc, vh)
            attn = attn.transpose(0, 2, 1, 3).reshape(B, L, d_model)
            ctx = ln(attn + x, ln1_g, ln1_b)
            o = jnp.maximum(ctx @ w1 + b1, 0.0) @ w2 + b2
            o = ln(o + ctx, ln2_g, ln2_b)
            ot = jax.nn.softmax(o @ wt2 + bt2, axis=-1)
        return o, ot

    ref_out, ref_out_t = reference(seq)

    # f32 MXU operands (exact module semantics).
    out, out_t = transformer_layer_rt(seq, params, d_t_real, n_heads=n_heads)
    jax.block_until_ready((out, out_t))
    assert jnp.allclose(out, ref_out, atol=5e-3, rtol=5e-3), "output mismatch (f32)"
    assert jnp.allclose(out_t, ref_out_t, atol=5e-3, rtol=5e-3), "output_t mismatch (f32)"

    # bf16 MXU operands with f32 accumulation (recommended default on v5e).
    out_bf, out_t_bf = transformer_layer_rt(
        seq, params, d_t_real, n_heads=n_heads, matmul_dtype=jnp.bfloat16)
    jax.block_until_ready((out_bf, out_t_bf))
    assert jnp.allclose(out_bf, ref_out, atol=1e-1, rtol=1e-1), "output mismatch (bf16)"
    assert jnp.allclose(out_t_bf, ref_out_t, atol=1e-1, rtol=1e-1), "output_t mismatch (bf16)"

    print("KERNEL_OK")
</pallas_src>

<mosaic_0001>
module attributes {stable_mosaic.version = 11 : i64} {
  func.func @transformer_layer_rt_kernel(%arg0: i32, %arg1: memref<8x32xf32, #tpu.memory_space<vmem>>, %arg2: memref<32x96xf32, #tpu.memory_space<vmem>>, %arg3: memref<1x96xf32, #tpu.memory_space<vmem>>, %arg4: memref<1x32xf32, #tpu.memory_space<vmem>>, %arg5: memref<1x32xf32, #tpu.memory_space<vmem>>, %arg6: memref<32x32xf32, #tpu.memory_space<vmem>>, %arg7: memref<1x32xf32, #tpu.memory_space<vmem>>, %arg8: memref<32x32xf32, #tpu.memory_space<vmem>>, %arg9: memref<1x32xf32, #tpu.memory_space<vmem>>, %arg10: memref<1x32xf32, #tpu.memory_space<vmem>>, %arg11: memref<1x32xf32, #tpu.memory_space<vmem>>, %arg12: memref<32x128xf32, #tpu.memory_space<vmem>>, %arg13: memref<1x128xf32, #tpu.memory_space<vmem>>, %arg14: memref<8x32xf32, #tpu.memory_space<vmem>>, %arg15: memref<8x128xf32, #tpu.memory_space<vmem>>) attributes {dimension_semantics = [#tpu.dimension_semantics<parallel>], iteration_bounds = array<i64: 2>, scalar_prefetch = 0 : i64, scratch_operands = 0 : i64, tpu.core_type = #tpu.core_type<tc>, window_params = [{transform_indices = @transform_0, window_bounds = array<i64: 8, 32>}, {pipeline_mode = #tpu.pipeline_mode<synchronous>, transform_indices = @transform_1, window_bounds = array<i64: 32, 96>}, {pipeline_mode = #tpu.pipeline_mode<synchronous>, transform_indices = @transform_2, window_bounds = array<i64: 1, 96>}, {pipeline_mode = #tpu.pipeline_mode<synchronous>, transform_indices = @transform_3, window_bounds = array<i64: 1, 32>}, {pipeline_mode = #tpu.pipeline_mode<synchronous>, transform_indices = @transform_4, window_bounds = array<i64: 1, 32>}, {pipeline_mode = #tpu.pipeline_mode<synchronous>, transform_indices = @transform_5, window_bounds = array<i64: 32, 32>}, {pipeline_mode = #tpu.pipeline_mode<synchronous>, transform_indices = @transform_6, window_bounds = array<i64: 1, 32>}, {pipeline_mode = #tpu.pipeline_mode<synchronous>, transform_indices = @transform_7, window_bounds = array<i64: 32, 32>}, {pipeline_mode = #tpu.pipeline_mode<synchronous>, transform_indices = @transform_8, window_bounds = array<i64: 1, 32>}, {pipeline_mode = #tpu.pipeline_mode<synchronous>, transform_indices = @transform_9, window_bounds = array<i64: 1, 32>}, {pipeline_mode = #tpu.pipeline_mode<synchronous>, transform_indices = @transform_10, window_bounds = array<i64: 1, 32>}, {pipeline_mode = #tpu.pipeline_mode<synchronous>, transform_indices = @transform_11, window_bounds = array<i64: 32, 128>}, {pipeline_mode = #tpu.pipeline_mode<synchronous>, transform_indices = @transform_12, window_bounds = array<i64: 1, 128>}, {transform_indices = @transform_13, window_bounds = array<i64: 8, 32>}, {transform_indices = @transform_14, window_bounds = array<i64: 8, 128>}]} {
    %c0 = arith.constant 0 : index
    %c0_0 = arith.constant 0 : index
    %0 = vector.load %arg1[%c0, %c0_0] : memref<8x32xf32, #tpu.memory_space<vmem>>, vector<8x32xf32>
    %c0_1 = arith.constant 0 : index
    %c0_2 = arith.constant 0 : index
    %1 = vector.load %arg2[%c0_1, %c0_2] : memref<32x96xf32, #tpu.memory_space<vmem>>, vector<32x96xf32>
    %cst = arith.constant dense<0.000000e+00> : vector<8x96xf32>
    %2 = tpu.matmul %0, %1, %cst {dimension_numbers = #tpu.dot_dimension_numbers<[1], [0], [0], [1], [0, 0, 1, 1], [], []>} : vector<8x32xf32>, vector<32x96xf32>, vector<8x96xf32> -> vector<8x96xf32>
    %c0_3 = arith.constant 0 : index
    %c0_4 = arith.constant 0 : index
    %3 = vector.load %arg3[%c0_3, %c0_4] : memref<1x96xf32, #tpu.memory_space<vmem>>, vector<1x96xf32>
    %4 = vector.broadcast %3 : vector<1x96xf32> to vector<8x96xf32>
    %5 = arith.addf %2, %4 : vector<8x96xf32>
    %6 = vector.extract_strided_slice %5 {offsets = [0, 0], sizes = [8, 32], strides = [1, 1]} : vector<8x96xf32> to vector<8x32xf32>
    %7 = vector.shape_cast %6 : vector<8x32xf32> to vector<8x4x8xf32>
    %8 = vector.extract_strided_slice %5 {offsets = [0, 32], sizes = [8, 32], strides = [1, 1]} : vector<8x96xf32> to vector<8x32xf32>
    %9 = vector.shape_cast %8 : vector<8x32xf32> to vector<8x4x8xf32>
    %10 = vector.extract_strided_slice %5 {offsets = [0, 64], sizes = [8, 32], strides = [1, 1]} : vector<8x96xf32> to vector<8x32xf32>
    %11 = vector.shape_cast %10 : vector<8x32xf32> to vector<8x4x8xf32>
    "tpu.trace_start"() <{level = 10 : i32, message = "ihd,jhd->hij"}> : () -> ()
    %cst_5 = arith.constant dense<0.000000e+00> : vector<4x8x8xf32>
    %12 = tpu.matmul %7, %9, %cst_5 {dimension_numbers = #tpu.dot_dimension_numbers<[2], [2], [0], [0], [0, 1, 0, 0, 1, 0], [1], [1]>} : vector<8x4x8xf32>, vector<8x4x8xf32>, vector<4x8x8xf32> -> vector<4x8x8xf32>
    "tpu.trace_stop"() : () -> ()
    %cst_6 = arith.constant dense<0xFF800000> : vector<4x8xf32>
    %13 = vector.multi_reduction <maximumf>, %12, %cst_6 [2] : vector<4x8x8xf32> to vector<4x8xf32>
    %14 = vector.shape_cast %13 : vector<4x8xf32> to vector<4x8x1xf32>
    %15 = vector.broadcast %14 : vector<4x8x1xf32> to vector<4x8x8xf32>
    %16 = arith.subf %12, %15 : vector<4x8x8xf32>
    %17 = math.exp %16 : vector<4x8x8xf32>
    %cst_7 = arith.constant dense<0.000000e+00> : vector<4x8xf32>
    %18 = vector.multi_reduction <add>, %17, %cst_7 [2] : vector<4x8x8xf32> to vector<4x8xf32>
    %19 = vector.shape_cast %18 : vector<4x8xf32> to vector<4x8x1xf32>
    %20 = tpu.reciprocal %19 {approx = true} : vector<4x8x1xf32> -> vector<4x8x1xf32>
    %21 = vector.broadcast %20 : vector<4x8x1xf32> to vector<4x8x8xf32>
    %22 = arith.mulf %17, %21 : vector<4x8x8xf32>
    "tpu.trace_start"() <{level = 10 : i32, message = "hij,jhd->ihd"}> : () -> ()
    %cst_8 = arith.constant dense<0.000000e+00> : vector<4x8x8xf32>
    %23 = tpu.matmul %11, %22, %cst_8 {dimension_numbers = #tpu.dot_dimension_numbers<[0], [2], [2], [1], [0, 1, 0, 2, 1, 1], [1], [0]>} : vector<8x4x8xf32>, vector<4x8x8xf32>, vector<4x8x8xf32> -> vector<4x8x8xf32>
    %24 = tpu.transpose %23, [2, 0, 1] : vector<4x8x8xf32> -> vector<8x4x8xf32>
    "tpu.trace_stop"() : () -> ()
    %25 = vector.shape_cast %24 : vector<8x4x8xf32> to vector<8x32xf32>
    %26 = arith.addf %25, %0 : vector<8x32xf32>
    %c0_9 = arith.constant 0 : index
    %c0_10 = arith.constant 0 : index
    %27 = vector.load %arg4[%c0_9, %c0_10] : memref<1x32xf32, #tpu.memory_space<vmem>>, vector<1x32xf32>
    %c0_11 = arith.constant 0 : index
    %c0_12 = arith.constant 0 : index
    %28 = vector.load %arg5[%c0_11, %c0_12] : memref<1x32xf32, #tpu.memory_space<vmem>>, vector<1x32xf32>
    %cst_13 = arith.constant dense<0.000000e+00> : vector<8xf32>
    %29 = vector.multi_reduction <add>, %26, %cst_13 [1] : vector<8x32xf32> to vector<8xf32>
    %30 = vector.shape_cast %29 : vector<8xf32> to vector<8x1xf32>
    %cst_14 = arith.constant 3.200000e+01 : f32
    %31 = vector.broadcast %cst_14 : f32 to vector<8x1xf32>
    %32 = arith.divf %30, %31 : vector<8x1xf32>
    %33 = vector.broadcast %32 : vector<8x1xf32> to vector<8x32xf32>
    %34 = arith.subf %26, %33 : vector<8x32xf32>
    %35 = arith.mulf %34, %34 : vector<8x32xf32>
    %cst_15 = arith.constant dense<0.000000e+00> : vector<8xf32>
    %36 = vector.multi_reduction <add>, %35, %cst_15 [1] : vector<8x32xf32> to vector<8xf32>
    %37 = vector.shape_cast %36 : vector<8xf32> to vector<8x1xf32>
    %cst_16 = arith.constant 3.200000e+01 : f32
    %38 = vector.broadcast %cst_16 : f32 to vector<8x1xf32>
    %39 = arith.divf %37, %38 : vector<8x1xf32>
    %40 = vector.broadcast %32 : vector<8x1xf32> to vector<8x32xf32>
    %41 = arith.subf %26, %40 : vector<8x32xf32>
    %cst_17 = arith.constant 9.99999974E-6 : f32
    %42 = vector.broadcast %cst_17 : f32 to vector<8x1xf32>
    %43 = arith.addf %39, %42 : vector<8x1xf32>
    %44 = math.rsqrt %43 : vector<8x1xf32>
    %45 = vector.broadcast %44 : vector<8x1xf32> to vector<8x32xf32>
    %46 = arith.mulf %41, %45 : vector<8x32xf32>
    %47 = vector.broadcast %27 : vector<1x32xf32> to vector<8x32xf32>
    %48 = arith.mulf %46, %47 : vector<8x32xf32>
    %49 = vector.broadcast %28 : vector<1x32xf32> to vector<8x32xf32>
    %50 = arith.addf %48, %49 : vector<8x32xf32>
    %c0_18 = arith.constant 0 : index
    %c0_19 = arith.constant 0 : index
    %51 = vector.load %arg6[%c0_18, %c0_19] : memref<32x32xf32, #tpu.memory_space<vmem>>, vector<32x32xf32>
    %cst_20 = arith.constant dense<0.000000e+00> : vector<8x32xf32>
    %52 = tpu.matmul %50, %51, %cst_20 {dimension_numbers = #tpu.dot_dimension_numbers<[1], [0], [0], [1], [0, 0, 1, 1], [], []>} : vector<8x32xf32>, vector<32x32xf32>, vector<8x32xf32> -> vector<8x32xf32>
    %c0_21 = arith.constant 0 : index
    %c0_22 = arith.constant 0 : index
    %53 = vector.load %arg7[%c0_21, %c0_22] : memref<1x32xf32, #tpu.memory_space<vmem>>, vector<1x32xf32>
    %54 = vector.broadcast %53 : vector<1x32xf32> to vector<8x32xf32>
    %55 = arith.addf %52, %54 : vector<8x32xf32>
    %cst_23 = arith.constant 0.000000e+00 : f32
    %56 = vector.broadcast %cst_23 : f32 to vector<8x32xf32>
    %57 = arith.maximumf %55, %56 : vector<8x32xf32>
    %c0_24 = arith.constant 0 : index
    %c0_25 = arith.constant 0 : index
    %58 = vector.load %arg8[%c0_24, %c0_25] : memref<32x32xf32, #tpu.memory_space<vmem>>, vector<32x32xf32>
    %cst_26 = arith.constant dense<0.000000e+00> : vector<8x32xf32>
    %59 = tpu.matmul %57, %58, %cst_26 {dimension_numbers = #tpu.dot_dimension_numbers<[1], [0], [0], [1], [0, 0, 1, 1], [], []>} : vector<8x32xf32>, vector<32x32xf32>, vector<8x32xf32> -> vector<8x32xf32>
    %c0_27 = arith.constant 0 : index
    %c0_28 = arith.constant 0 : index
    %60 = vector.load %arg9[%c0_27, %c0_28] : memref<1x32xf32, #tpu.memory_space<vmem>>, vector<1x32xf32>
    %61 = vector.broadcast %60 : vector<1x32xf32> to vector<8x32xf32>
    %62 = arith.addf %59, %61 : vector<8x32xf32>
    %63 = arith.addf %62, %50 : vector<8x32xf32>
    %c0_29 = arith.constant 0 : index
    %c0_30 = arith.constant 0 : index
    %64 = vector.load %arg10[%c0_29, %c0_30] : memref<1x32xf32, #tpu.memory_space<vmem>>, vector<1x32xf32>
    %c0_31 = arith.constant 0 : index
    %c0_32 = arith.constant 0 : index
    %65 = vector.load %arg11[%c0_31, %c0_32] : memref<1x32xf32, #tpu.memory_space<vmem>>, vector<1x32xf32>
    %cst_33 = arith.constant dense<0.000000e+00> : vector<8xf32>
    %66 = vector.multi_reduction <add>, %63, %cst_33 [1] : vector<8x32xf32> to vector<8xf32>
    %67 = vector.shape_cast %66 : vector<8xf32> to vector<8x1xf32>
    %cst_34 = arith.constant 3.200000e+01 : f32
    %68 = vector.broadcast %cst_34 : f32 to vector<8x1xf32>
    %69 = arith.divf %67, %68 : vector<8x1xf32>
    %70 = vector.broadcast %69 : vector<8x1xf32> to vector<8x32xf32>
    %71 = arith.subf %63, %70 : vector<8x32xf32>
    %72 = arith.mulf %71, %71 : vector<8x32xf32>
    %cst_35 = arith.constant dense<0.000000e+00> : vector<8xf32>
    %73 = vector.multi_reduction <add>, %72, %cst_35 [1] : vector<8x32xf32> to vector<8xf32>
    %74 = vector.shape_cast %73 : vector<8xf32> to vector<8x1xf32>
    %cst_36 = arith.constant 3.200000e+01 : f32
    %75 = vector.broadcast %cst_36 : f32 to vector<8x1xf32>
    %76 = arith.divf %74, %75 : vector<8x1xf32>
    %77 = vector.broadcast %69 : vector<8x1xf32> to vector<8x32xf32>
    %78 = arith.subf %63, %77 : vector<8x32xf32>
    %cst_37 = arith.constant 9.99999974E-6 : f32
    %79 = vector.broadcast %cst_37 : f32 to vector<8x1xf32>
    %80 = arith.addf %76, %79 : vector<8x1xf32>
    %81 = math.rsqrt %80 : vector<8x1xf32>
    %82 = vector.broadcast %81 : vector<8x1xf32> to vector<8x32xf32>
    %83 = arith.mulf %78, %82 : vector<8x32xf32>
    %84 = vector.broadcast %64 : vector<1x32xf32> to vector<8x32xf32>
    %85 = arith.mulf %83, %84 : vector<8x32xf32>
    %86 = vector.broadcast %65 : vector<1x32xf32> to vector<8x32xf32>
    %87 = arith.addf %85, %86 : vector<8x32xf32>
    %c0_38 = arith.constant 0 : index
    %c0_39 = arith.constant 0 : index
    %88 = vector.load %arg12[%c0_38, %c0_39] : memref<32x128xf32, #tpu.memory_space<vmem>>, vector<32x128xf32>
    %cst_40 = arith.constant dense<0.000000e+00> : vector<8x128xf32>
    %89 = tpu.matmul %87, %88, %cst_40 {dimension_numbers = #tpu.dot_dimension_numbers<[1], [0], [0], [1], [0, 0, 1, 1], [], []>} : vector<8x32xf32>, vector<32x128xf32>, vector<8x128xf32> -> vector<8x128xf32>
    %c0_41 = arith.constant 0 : index
    %c0_42 = arith.constant 0 : index
    %90 = vector.load %arg13[%c0_41, %c0_42] : memref<1x128xf32, #tpu.memory_space<vmem>>, vector<1x128xf32>
    %91 = vector.broadcast %90 : vector<1x128xf32> to vector<8x128xf32>
    %92 = arith.addf %89, %91 : vector<8x128xf32>
    %cst_43 = arith.constant dense<0xFF800000> : vector<8xf32>
    %93 = vector.multi_reduction <maximumf>, %92, %cst_43 [1] : vector<8x128xf32> to vector<8xf32>
    %94 = vector.shape_cast %93 : vector<8xf32> to vector<8x1xf32>
    %95 = vector.broadcast %94 : vector<8x1xf32> to vector<8x128xf32>
    %96 = arith.subf %92, %95 : vector<8x128xf32>
    %97 = math.exp %96 : vector<8x128xf32>
    %cst_44 = arith.constant dense<0.000000e+00> : vector<8xf32>
    %98 = vector.multi_reduction <add>, %97, %cst_44 [1] : vector<8x128xf32> to vector<8xf32>
    %99 = vector.shape_cast %98 : vector<8xf32> to vector<8x1xf32>
    %100 = vector.broadcast %99 : vector<8x1xf32> to vector<8x128xf32>
    %101 = arith.divf %97, %100 : vector<8x128xf32>
    %c0_45 = arith.constant 0 : index
    %c0_46 = arith.constant 0 : index
    %102 = vector.load %arg14[%c0_45, %c0_46] : memref<8x32xf32, #tpu.memory_space<vmem>>, vector<8x32xf32>
    tpu.vector_store %arg14[%c0_45, %c0_46], %87 {strides = array<i32>} : memref<8x32xf32, #tpu.memory_space<vmem>>, vector<8x32xf32>,
    %c0_47 = arith.constant 0 : index
    %c0_48 = arith.constant 0 : index
    %103 = vector.load %arg15[%c0_47, %c0_48] : memref<8x128xf32, #tpu.memory_space<vmem>>, vector<8x128xf32>
    tpu.vector_store %arg15[%c0_47, %c0_48], %101 {strides = array<i32>} : memref<8x128xf32, #tpu.memory_space<vmem>>, vector<8x128xf32>,
    return
  }
  func.func @transform_0(%arg0: i32) -> (i32, i32) {
    %c0_i32 = arith.constant 0 : i32
    %c0_i32_0 = arith.constant 0 : i32
    return %arg0, %c0_i32 : i32, i32
  }
  func.func @transform_1(%arg0: i32) -> (i32, i32) {
    %c0_i32 = arith.constant 0 : i32
    %c0_i32_0 = arith.constant 0 : i32
    %c0_i32_1 = arith.constant 0 : i32
    return %c0_i32, %c0_i32_0 : i32, i32
  }
  func.func @transform_2(%arg0: i32) -> (i32, i32) {
    %c0_i32 = arith.constant 0 : i32
    %c0_i32_0 = arith.constant 0 : i32
    %c0_i32_1 = arith.constant 0 : i32
    return %c0_i32, %c0_i32_0 : i32, i32
  }
  func.func @transform_3(%arg0: i32) -> (i32, i32) {
    %c0_i32 = arith.constant 0 : i32
    %c0_i32_0 = arith.constant 0 : i32
    %c0_i32_1 = arith.constant 0 : i32
    return %c0_i32, %c0_i32_0 : i32, i32
  }
  func.func @transform_4(%arg0: i32) -> (i32, i32) {
    %c0_i32 = arith.constant 0 : i32
    %c0_i32_0 = arith.constant 0 : i32
    %c0_i32_1 = arith.constant 0 : i32
    return %c0_i32, %c0_i32_0 : i32, i32
  }
  func.func @transform_5(%arg0: i32) -> (i32, i32) {
    %c0_i32 = arith.constant 0 : i32
    %c0_i32_0 = arith.constant 0 : i32
    %c0_i32_1 = arith.constant 0 : i32
    return %c0_i32, %c0_i32_0 : i32, i32
  }
  func.func @transform_6(%arg0: i32) -> (i32, i32) {
    %c0_i32 = arith.constant 0 : i32
    %c0_i32_0 = arith.constant 0 : i32
    %c0_i32_1 = arith.constant 0 : i32
    return %c0_i32, %c0_i32_0 : i32, i32
  }
  func.func @transform_7(%arg0: i32) -> (i32, i32) {
    %c0_i32 = arith.constant 0 : i32
    %c0_i32_0 = arith.constant 0 : i32
    %c0_i32_1 = arith.constant 0 : i32
    return %c0_i32, %c0_i32_0 : i32, i32
  }
  func.func @transform_8(%arg0: i32) -> (i32, i32) {
    %c0_i32 = arith.constant 0 : i32
    %c0_i32_0 = arith.constant 0 : i32
    %c0_i32_1 = arith.constant 0 : i32
    return %c0_i32, %c0_i32_0 : i32, i32
  }
  func.func @transform_9(%arg0: i32) -> (i32, i32) {
    %c0_i32 = arith.constant 0 : i32
    %c0_i32_0 = arith.constant 0 : i32
    %c0_i32_1 = arith.constant 0 : i32
    return %c0_i32, %c0_i32_0 : i32, i32
  }
  func.func @transform_10(%arg0: i32) -> (i32, i32) {
    %c0_i32 = arith.constant 0 : i32
    %c0_i32_0 = arith.constant 0 : i32
    %c0_i32_1 = arith.constant 0 : i32
    return %c0_i32, %c0_i32_0 : i32, i32
  }
  func.func @transform_11(%arg0: i32) -> (i32, i32) {
    %c0_i32 = arith.constant 0 : i32
    %c0_i32_0 = arith.constant 0 : i32
    %c0_i32_1 = arith.constant 0 : i32
    return %c0_i32, %c0_i32_0 : i32, i32
  }
  func.func @transform_12(%arg0: i32) -> (i32, i32) {
    %c0_i32 = arith.constant 0 : i32
    %c0_i32_0 = arith.constant 0 : i32
    %c0_i32_1 = arith.constant 0 : i32
    return %c0_i32, %c0_i32_0 : i32, i32
  }
  func.func @transform_13(%arg0: i32) -> (i32, i32) {
    %c0_i32 = arith.constant 0 : i32
    %c0_i32_0 = arith.constant 0 : i32
    return %arg0, %c0_i32 : i32, i32
  }
  func.func @transform_14(%arg0: i32) -> (i32, i32) {
    %c0_i32 = arith.constant 0 : i32
    %c0_i32_0 = arith.constant 0 : i32
    return %arg0, %c0_i32 : i32, i32
  }
}

</mosaic_0001>

<bundles_post_ra>
// kernel: tpu_custom_call.1
= control target key start
LH: loop header
LB: loop body
LE: loop exit
PB: predicated region body
PF: predicated region fallthrough
CT: control target
= control target key end

     0   :  { %s3352_s0 = inlined_call_operand.hbm [shape: f32[16,32], index: 0, kind: input, shape index: {}]   ;;  %s3353_s1 = inlined_call_operand.hbm [shape: f32[32,96], index: 1, kind: input, shape index: {}]   ;;  %s3354_s2 = inlined_call_operand.vmem [shape: f32[1,96], index: 2, kind: input, shape index: {}]   ;;  %s3355_s3 = inlined_call_operand.vmem [shape: f32[1,32], index: 3, kind: input, shape index: {}]   ;;  %s3356_s4 = inlined_call_operand.vmem [shape: f32[1,32], index: 4, kind: input, shape index: {}]   ;;  %s3357_s5 = inlined_call_operand.hbm [shape: f32[32,32], index: 5, kind: input, shape index: {}]   ;;  %s3358_s6 = inlined_call_operand.vmem [shape: f32[1,32], index: 6, kind: input, shape index: {}]   ;;  %s3359_s7 = inlined_call_operand.hbm [shape: f32[32,32], index: 7, kind: input, shape index: {}]   ;;  %s3360_s8 = inlined_call_operand.vmem [shape: f32[1,32], index: 8, kind: input, shape index: {}]   ;;  %s3361_s9 = inlined_call_operand.vmem [shape: f32[1,32], index: 9, kind: input, shape index: {}]   ;;  %s3362_s10 = inlined_call_operand.vmem [shape: f32[1,32], index: 10, kind: input, shape index: {}]   ;;  %s3363_s11 = inlined_call_operand.vmem [shape: f32[32,128], index: 11, kind: input, shape index: {}]   ;;  %s3364_s12 = inlined_call_operand.vmem [shape: f32[1,128], index: 12, kind: input, shape index: {}]   ;;  %s3365_s13 = inlined_call_operand.hbm [shape: f32[16,32], index: 13, kind: output, shape index: {0}]   ;;  %s3366_s14 = inlined_call_operand.hbm [shape: f32[16,128], index: 14, kind: output, shape index: {1}]  }
   0x1   :  { %3376 = sst [smem:[#allocation20_spill]] %s3361_s9 }
   0x2   :  { %3377 = sst [smem:[#allocation21_spill]] %s3362_s10 }
   0x3   :  { %3378 = sst [smem:[#allocation22_spill]] %s3363_s11 }
   0x4   :  { %3379 = sst [smem:[#allocation23_spill]] %s3364_s12 }
   0x5   :  { %3380 = sst [smem:[#allocation24_spill]] %s3365_s13 }
   0x6   :  { %3381 = sst [smem:[#allocation25_spill]] %s3366_s14 }
   0x7   :  { %20 = vsyncpa [#allocation3], 0 }
   0x8   :  { %22 = vsyncpa [#allocation3 + $0x1], 0 }
   0x9   :  { %23 = vsyncpa [#allocation6], 0 }
   0xa   :  { %24 = vsyncpa [#allocation9], 0 }
   0xb   :  { %25 = vsyncpa [#allocation4], 0 }
   0xc   :  { %27 = vsyncpa [#allocation4 + $0x1], 0 }
   0xd   :  { %28 = vsyncpa [#allocation12], 0 }
   0xe   :  { %30 = vsyncpa [#allocation12 + $0x1], 0  ;;  %s2947_s29 = smov 0   ;;  %s2949_s30 = smov 0  }
   0xf   :  { %s2951_s15 = smov 0   ;;  %s2953_s16 = smov 0  }
  0x10 LB: > { %3382 = sst [smem:[#allocation18_spill]] %s2837_s29  ;;  %s2968_s17 = sadd.s32 4294967295, %s2849_s16   ;;  %s2849_s16 = sphi %s2953_s16, %s3412_s16   ;;  %s2845_s15 = sphi %s2951_s15, %s3411_s15   ;;  %s2841_s30 = sphi %s2949_s30, %s3410_s30   ;;  %s2837_s29 = sphi %s2947_s29, %s3409_s29  }
  0x11   : > { %s2317_s18 = sadd.s32 4294967294, %s2849_s16   ;;  %p56_p0 = scmp.ne.s32.totalorder %s2841_s30, %s2837_s29 }
  0x12   : > { %p3371_p1 = scmp.eq.s32.totalorder %s2968_s17, 0  ;;  %p338_p3 = scmp.eq.s32.totalorder %s2317_s18, 1 }
  0x13   : > { %p2318_p5 = scmp.ge.s32.totalorder %s2849_s16, 1  ;;  %p371_p7 = scmp.lt.s32.totalorder %s2849_s16, 3 }
  0x14   : > { %p2977_p4 = por %p3371_p1, %p56_p0  ;;  %p2982_p6 = por %p338_p3, %p56_p0 }
  0x15   : > { %p2987_p8 = pnand %p2318_p5, %p371_p7  ;;  %s2851_s22 = smov [#allocation5]  }
  0x16   : > { %s3383_s19 = scalar_select %p2977_p4, 1, 0 }
  0x17   : > { %s3384_s20 = scalar_select %p2982_p6, 1, 0 }
  0x18   : > { %s3386_s21 = scalar_select %p2987_p8, 1, 0 }
  0x19   : > { %3385 = sst [smem:[#allocation19_spill]] %s3384_s20  ;;  %s383_s23 = sshll.u32 %s2851_s22, 4  ;;  %s2991_s23 = int_to_ptr.vmem [resolvable:$true] %s383_s23 }
  0x1a   : > { %p2526_p9 = pneg %p2987_p8  ;;  %s2852_s25 = smov [#allocation7]  }
  0x1b   : > { %s405_s26 = sshll.u32 %s2852_s25, 4  ;;  %s2853_s27 = smov [#allocation8]   ;;  %s3002_s26 = int_to_ptr.vmem [resolvable:$true] %s405_s26 }
  0x1c   : > { %p2998_p11 = pnand %p2526_p9, %p3371_p1  ;;  %s3004_s28 = sshll.u32 %s2853_s27, 4  ;;  %s422_s28 = int_to_ptr.vmem [resolvable:$true] %s3004_s28 }
  0x1d   : > { %s2629_s20 = scalar_lea.hbm %s3353_s1, 512 }
  0x1e   : > { %p2630_p12 = scmp.ne.s32.totalorder %s3353_s1, %s2629_s20  ;;  %p3014_p13 = pneg %p2998_p11 }
  0x1f   : > { %p2636_p5 = scmp.lt.u32.totalorder %s2629_s20, %s3353_s1 }
  0x20   : > { %p2632_p0 = pnand %p3014_p13, %p2630_p12 }
  0x22   : > { %p2633_p3 = pneg %p2632_p0 }
  0x24   : > { %p2638_p7 = pnand %p2636_p5, %p2633_p3 }
  0x26   : > { %2641 = shalt.err (!%p2638_p7)
}
  0x27   : > { %s2642_s14 = scalar_lea.vmem %s2991_s23, 512  ;;  %p2650_p2 = scmp.lt.s32.totalorder %s2991_s23, %s2991_s23 }
  0x28   : > { %p2643_p9 = scmp.ne.s32.totalorder %s2991_s23, %s2642_s14  ;;  %p2651_p6 = scmp.lt.s32.totalorder %s2642_s14, %s2642_s14 }
  0x2a   : > { %p2645_p10 = pnand %p2643_p9, %p3014_p13  ;;  %p2652_p12 = por %p2651_p6, %p2650_p2 }
  0x2c   : > { %p2646_p1 = pneg %p2645_p10 }
  0x2e   : > { %p2653_p0 = pnand %p2652_p12, %p2646_p1 }
  0x30   : > { %2656 = shalt.err (!%p2653_p0)
}
  0x31   : > { %s2854_s29 = smov 128   ;;  %s2855_s20 = smov 8  }
  0x32   : > { %2529 = dma.hbm_to_vmem [thread:$0]  (!%p2998_p11), %s3353_s1, 512, %s2991_s23, [#allocation6], %s2854_s29, %s2854_s29, %s2855_s20  }
  0x33   : > { %s2657_s14 = scalar_lea.hbm %s3357_s5, 512 }
  0x34   : > { %p2658_p1 = scmp.ne.s32.totalorder %s3357_s5, %s2657_s14  ;;  %p2664_p10 = scmp.lt.u32.totalorder %s2657_s14, %s3357_s5 }
  0x36   : > { %p2660_p2 = pnand %p2658_p1, %p3014_p13 }
  0x38   : > { %p2661_p6 = pneg %p2660_p2 }
  0x3a   : > { %p2666_p3 = pnand %p2664_p10, %p2661_p6 }
  0x3c   : > { %2669 = shalt.err (!%p2666_p3)
}
  0x3d   : > { %s2670_s23 = scalar_lea.vmem %s3002_s26, 512  ;;  %p2678_p12 = scmp.lt.s32.totalorder %s3002_s26, %s3002_s26 }
  0x3e   : > { %p2671_p5 = scmp.ne.s32.totalorder %s3002_s26, %s2670_s23  ;;  %p2679_p0 = scmp.lt.s32.totalorder %s2670_s23, %s2670_s23 }
  0x40   : > { %p2673_p7 = pnand %p2671_p5, %p3014_p13  ;;  %p2680_p1 = por %p2679_p0, %p2678_p12 }
  0x42   : > { %p2674_p9 = pneg %p2673_p7 }
  0x44   : > { %p2681_p2 = pnand %p2680_p1, %p2674_p9 }
  0x46   : > { %2684 = shalt.err (!%p2681_p2)
}
  0x47   : > { %2532 = dma.hbm_to_vmem [thread:$0]  (!%p2998_p11), %s3357_s5, 512, %s3002_s26, [#allocation6], %s2854_s29, %s2854_s29, %s2855_s20  }
  0x48   : > { %s2685_s18 = scalar_lea.hbm %s3359_s7, 512 }
  0x49   : > { %p2686_p6 = scmp.ne.s32.totalorder %s3359_s7, %s2685_s18  ;;  %p2692_p5 = scmp.lt.u32.totalorder %s2685_s18, %s3359_s7 }
  0x4b   : > { %p2688_p10 = pnand %p2686_p6, %p3014_p13 }
  0x4d   : > { %p2689_p3 = pneg %p2688_p10 }
  0x4f   : > { %p2694_p7 = pnand %p2692_p5, %p2689_p3 }
  0x51   : > { %2697 = shalt.err (!%p2694_p7)
}
  0x52   : > { %s2698_s23 = scalar_lea.vmem %s422_s28, 512  ;;  %p2706_p1 = scmp.lt.s32.totalorder %s422_s28, %s422_s28 }
  0x53   : > { %p2699_p9 = scmp.ne.s32.totalorder %s422_s28, %s2698_s23  ;;  %p2707_p2 = scmp.lt.s32.totalorder %s2698_s23, %s2698_s23 }
  0x55   : > { %p2701_p12 = pnand %p2699_p9, %p3014_p13  ;;  %p2708_p4 = por %p2707_p2, %p2706_p1 }
  0x57   : > { %p2702_p0 = pneg %p2701_p12 }
  0x59   : > { %p2709_p8 = pnand %p2708_p4, %p2702_p0 }
  0x5b   : > { %2712 = shalt.err (!%p2709_p8)
}
  0x5c   : > { %2535 = dma.hbm_to_vmem [thread:$0]  (!%p2998_p11), %s3359_s7, 512, %s422_s28, [#allocation9], %s2854_s29, %s2854_s29, %s2855_s20  }
  0x5d   : > { %s3087_s13 = sadd.s32 1, %s2849_s16   ;;  %s43_s10 = sadd.s32 1, %s2845_s15 }
  0x5e   : > { %s40_s24 = ssub.s32 %s2849_s16, %s3087_s13  ;;  %p50_p8 = scmp.ne.s32.totalorder %s2845_s15, %s2841_s30 }
  0x5f   : > { %p41_p4 = scmp.eq.s32.totalorder %s40_s24, 0  ;;  %p51_p13 = scmp.eq.s32.totalorder %s2849_s16, 0 }
  0x60   : > { %p2550_p6 = scmp.lt.s32.totalorder %s2849_s16, 2  ;;  %p3389_p3 = scmp.eq.s32.totalorder %s2968_s17, 1 }
  0x61   : > { %s3097_s11 = scalar_select %p41_p4, %s2845_s15, %s43_s10  }
  0x62   : > { %p52_p10 = por %p51_p13, %p50_p8  ;;  %p3101_p5 = por %p3389_p3, %p50_p8 }
  0x63   : > { %s450_s18 = sand.u32 1, %s2845_s15   ;;  %s2324_s22 = sshll.u32 %s2849_s16, 7 }
  0x64   : > { %s2323_s28 = sshll.u32 %s450_s18, 3  ;;  %s3110_s25 = scalar_lea.hbm %s3352_s0, %s2324_s22 }
  0x65   : > { %s454_s27 = scalar_lea.vmem [#allocation2], %s2323_s28  ;;  %p3112_p11 = pnand %p2550_p6, %p52_p10 }
  0x66   : > { %s461_s14 = sshll.u32 %s454_s27, 4  ;;  %s451_s26 = scalar_lea.sflag [#allocation3], %s450_s18  ;;  %s3116_s14 = int_to_ptr.vmem [resolvable:$true] %s461_s14 }
  0x67   : > { %s2713_s9 = scalar_lea.hbm %s3110_s25, 128  ;;  %p2715_p9 = pneg %p3112_p11 }
  0x68   : > { %p2714_p7 = scmp.ne.s32.totalorder %s3110_s25, %s2713_s9  ;;  %s2718_s22 = scalar_lea.hbm %s3352_s0, 256 }
  0x69   : > { %p2719_p1 = scmp.lt.u32.totalorder %s3110_s25, %s3352_s0  ;;  %p2720_p2 = scmp.lt.u32.totalorder %s2718_s22, %s2713_s9 }
  0x6a   : > { %p2716_p12 = pnand %p2715_p9, %p2714_p7  ;;  %p2722_p8 = scmp.lt.u32.totalorder %s2713_s9, %s3110_s25 }
  0x6b   : > { %p2721_p4 = por %p2720_p2, %p2719_p1 }
  0x6c   : > { %p2717_p0 = pneg %p2716_p12 }
  0x6d   : > { %p2723_p13 = por %p2722_p8, %p2721_p4 }
  0x6f   : > { %p2724_p6 = pnand %p2723_p13, %p2717_p0 }
  0x71   : > { %2727 = shalt.err (!%p2724_p6)
}
  0x72   : > { %s2728_s18 = scalar_lea.vmem %s3116_s14, 128  ;;  %s2856_s20 = smov [#allocation2]  }
  0x73   : > { %p2729_p10 = scmp.ne.s32.totalorder %s3116_s14, %s2728_s18  ;;  %s2733_s27 = sshll.u32 %s2856_s20, 4  ;;  %s2734_s27 = int_to_ptr.vmem [resolvable:$false] %s2733_s27 }
  0x74   : > { %s2735_s24 = scalar_lea.vmem %s2734_s27, 256  ;;  %p2736_p12 = scmp.lt.s32.totalorder %s3116_s14, %s2734_s27 }
  0x75   : > { %p2731_p3 = pnand %p2729_p10, %p2715_p9  ;;  %p2737_p1 = scmp.lt.s32.totalorder %s2735_s24, %s2728_s18 }
  0x77   : > { %p2732_p7 = pneg %p2731_p3  ;;  %p2738_p2 = por %p2737_p1, %p2736_p12 }
  0x79   : > { %p2739_p4 = pnand %p2738_p2, %p2732_p7 }
  0x7b   : > { %2742 = shalt.err (!%p2739_p4)
}
  0x7c   : > { %2539 = dma.hbm_to_vmem [thread:$0]  (!%p3112_p11), %s3110_s25, 128, %s3116_s14, %s451_s26  }
  0x7d   : > { %p3392_p0 = scmp.ne.s32.totalorder %s3386_s21, 0 }
  0x7e   : > { %s3146_s9 = sand.u32 (!%p3392_p0), 1, %s2841_s30   ;;  %p3393_p9 = scmp.ne.s32.totalorder (!%p3392_p0), %s3383_s19, 0 }
  0x7f   : > { %470 = sbr.rel (%p3392_p0) target bundleno = 3369 (0xd29), region = 72  ;;  %s3149_s10 = sshll.u32 (!%p3392_p0), %s3146_s9, 3 }
  0x80   : > { %s473_s22 = scalar_lea.sflag (!%p3392_p0), [#allocation3], %s3146_s9  ;;  %s476_s28 = scalar_lea.vmem (!%p3392_p0), [#allocation2], %s3149_s10 }
  0x86   : > { %2816 = dma.done.wait (%p3393_p9), %s473_s22, 128  }
  0x87   : > { %2818 = vsyncadd (%p3393_p9), %s473_s22, 4294967168  ;;  %p3394_p11 = scmp.eq.s32.totalorder %s2968_s17, 0 }
  0x89   : > { %2820 = dma.done.wait (%p3394_p11), [#allocation6], 1024   ;;  %p3395_p8 = pmov %p3394_p11 }
  0x8b   : > { %2822 = vsyncadd (%p3395_p8), [#allocation6], 4294966272  ;;  %p3396_p13 = pmov %p3395_p8 }
  0x8c   : > { %p3397_p6 = pmov %p3395_p8 }
  0x8d   : > { %2824 = dma.done.wait (%p3396_p13), [#allocation9], 512  }
  0x8e   : > { %2826 = vsyncadd (%p3397_p6), [#allocation9], 4294966784  ;;  %v2857_v0 = vmov 0.0|0.0   ;;  %vm2858_vm0 = vmmov 0   ;;  %v2859_v1 = vmov 0.0   ;;  %v539_v2 = vld [vmem:[#allocation5] sm:$0xff] }
  0x8f   : > { %2484 = vmatprep.subr.bf16.mxu0 %v2857_v0  ;;  %2408 = vmatprep.mubr.msk.f32.mxu0 %vm2858_vm0, %v2859_v1  ;;  %v540_v3 = vld [vmem:[#allocation5 + $0x8] sm:$0xff]  ;;  %v541_v4 = vld [vmem:[#allocation5 + $0x10] sm:$0xff]  ;;  %v542_v6 = vld [vmem:[#allocation5 + $0x18] sm:$0xff]  ;;  %vm550_vm1 = vcmask 261120   ;;  %s2860_s25 = smov 104   ;;  %s2861_s14 = smov 120  }
  0x90   : > { %2416 = vmatprep.subr.mxu1 %v2859_v1  ;;  %2418 = vmatprep.mubr.msk.f32.mxu1 %vm2858_vm0, %v2859_v1  ;;  %v2485_v5 = vpack.c.bf16 %v540_v3, %v539_v2  ;;  %v2488_v7 = vpack.c.bf16 %v542_v6, %v541_v4  ;;  %v3172_v8 = vld [vmem:[%s476_s28] sm:$0xff]  ;;  %s2862_s23 = smov 96   ;;  %s2863_s26 = smov 112   ;;  %vm771_vm2 = vcmask 64512   ;;  %vm1825_vm3 = vcmask 130048  }
  0x91   : > { %v2332_v9 = vld [vmem:[%s3354_s2] ss:$0 sm:$0xff]  ;;  %s2864_s29 = smov 64   ;;  %s2867_s18 = smov 16   ;;  %vm1827_vm4 = vcmask 195584  }
  0x92   : > { %2486 = vmatpush3.bf16.msra.mxu0 %v2485_v5  ;;  %s2868_s20 = smov 8   ;;  %s2869_s27 = smov 24  }
  0x93   : > { %2487 = vmatprep.subr.bf16.mxu0 %v2857_v0  ;;  %s3401_s22 = sld [smem:[#allocation23_spill]]  ;;  %s3375_s28 = sshll.u32 %s2968_s17, 7 }
  0x96   : > { %2489 = vmatpush3.bf16.msra.mxu0 %v2488_v7 }
  0x97   : > { %2411 = vmatprep.subr.mxu0 %v2859_v1 }
  0x99   : > { %2409 = vmatmul.mubr.msk.f32.vlgmr.msra.gmra.mrb[0].mxu0 %vm550_vm1, %v3172_v8 }
  0x9a   : > { %2413 = vmatprep.mubr.msk.f32.mxu0 %vm2858_vm0, %v2859_v1 }
 0x16c   : > { %v620_v10 = vpop.f32.mrb[0].mxu0 }
 0x16d   : > { %v621_v11 = vadd.f32 %v2332_v9, %v620_v10  ;;  %v2410_v12 = vpop.f32.mrb[1].mxu0 }
 0x16f   : > { %629 = vrot.lane.b32.xlu1 %v621_v11, %s2860_s25  ;;  %625 = vrot.lane.b32.xlu0 %v621_v11, %s2861_s14  ;;  %s3399_s14 = sld [smem:[#allocation20_spill]]  ;;  %s3402_s25 = sld [smem:[#allocation24_spill]] }
 0x173   : > { %631 = vrot.lane.b32.xlu1 %v621_v11, %s2862_s23  ;;  %627 = vrot.lane.b32.xlu0 %v621_v11, %s2863_s26  ;;  %s2155_s26 = scalar_lea.sflag [#allocation4], %s3146_s9 }
 0x1e1   : > { %v626_v13 = vpop.permute.xlu0 %625  ;;  %v630_v14 = vpop.permute.xlu1 %629 }
 0x1e2   : > { %633 = vrot.lane.b32.xlu0 %v626_v13, %s2862_s23 }
 0x1e5   : > { %v628_v15 = vpop.permute.xlu0 %627  ;;  %v632_v16 = vpop.permute.xlu1 %631 }
 0x1e6   : > { %637 = vrot.lane.b32.xlu0 %v630_v14, %s2862_s23  ;;  %635 = vrot.lane.b32.xlu1 %v628_v15, %s2862_s23 }
 0x20f   : > { %643 = vxpose.xlu1.b32.start.end [1/1] (short) (narrow) %v632_v16, 8 }
 0x254   : > { %v634_v17 = vpop.permute.xlu0 %633 }
 0x255   : > { %675 = vxpose.xlu0.b32.start.end [1/1] (short) (narrow) %v634_v17, 8 }
 0x258   : > { %v636_v18 = vpop.permute.xlu1 %635  ;;  %v638_v19 = vpop.permute.xlu0 %637 }
 0x259   : > { %707 = vxpose.xlu0.b32.start.end [1/1] (short) (narrow) %v636_v18, 8 }
 0x25d   : > { %739 = vxpose.xlu0.b32.start.end [1/1] (short) (narrow) %v638_v19, 8 }
 0x28f   : > { %v659_v20 = vpop.trf.xlu1 }
 0x290   : > { %2412 = vmatpush3.msra.mxu0 %v659_v20 }
 0x291   : > { %2414 = vmatmul.mubr.msk.f32.vlgmr.msra.gmra.mrb[2].mxu0 %vm771_vm2, %v621_v11  ;;  %2426 = vmatprep.subr.mxu0 %v2859_v1 }
 0x292   : > { %2428 = vmatprep.mubr.msk.f32.mxu0 %vm2858_vm0, %v2859_v1 }
 0x2d5   : > { %v691_v21 = vpop.trf.xlu0 }
 0x2d6   : > { %2417 = vmatpush3.msra.mxu1 %v691_v21 }
 0x2d7   : > { %2419 = vmatmul.mubr.msk.f32.vlgmr.msra.gmra.mrb[0].mxu1 %vm771_vm2, %v626_v13  ;;  %2421 = vmatprep.subr.mxu1 %v2859_v1 }
 0x2d8   : > { %2423 = vmatprep.mubr.msk.f32.mxu1 %vm2858_vm0, %v2859_v1 }
 0x2d9   : > { %v723_v22 = vpop.trf.xlu0 }
 0x2da   : > { %2422 = vmatpush3.msra.mxu1 %v723_v22 }
 0x2db   : > { %2424 = vmatmul.mubr.msk.f32.vlgmr.msra.gmra.mrb[2].mxu1 %vm771_vm2, %v628_v15  ;;  %2431 = vmatprep.subr.mxu1 %v2859_v1 }
 0x2dc   : > { %2433 = vmatprep.mubr.msk.f32.mxu1 %vm2858_vm0, %v2859_v1 }
 0x2dd   : > { %v755_v23 = vpop.trf.xlu0 }
 0x2de   : > { %2427 = vmatpush3.msra.mxu0 %v755_v23 }
 0x2df   : > { %2429 = vmatmul.mubr.msk.f32.vlgmr.msra.gmra.mrb[4].mxu0 %vm771_vm2, %v630_v14  ;;  %2436 = vmatprep.subr.mxu0 %v2859_v1 }
 0x2e0   : > { %2438 = vmatprep.mubr.msk.f32.mxu0 %vm2858_vm0, %v2859_v1 }
 0x364   : > { %v840_v24 = vpop.f32.mrb[2].mxu0 }
 0x365   : > { %v2415_v25 = vpop.f32.mrb[3].mxu0  ;;  %v1060_v26 = vsel %vm771_vm2, %v840_v24, -inf }
 0x366   : > { %1061 = vmax.xlane.f32.xlu1 %v1060_v26  ;;  %v1681_v26 = vlaneseq }
 0x3aa   : > { %v912_v27 = vpop.f32.mrb[0].mxu1 }
 0x3ab   : > { %v2420_v28 = vpop.f32.mrb[1].mxu1  ;;  %v1063_v29 = vsel %vm771_vm2, %v912_v27, -inf }
 0x3ac   : > { %1064 = vmax.xlane.f32.xlu0 %v1063_v29 }
 0x3ae   : > { %v984_v30 = vpop.f32.mrb[2].mxu1 }
 0x3af   : > { %v2425_v31 = vpop.f32.mrb[3].mxu1  ;;  %v1066_v32 = vsel %vm771_vm2, %v984_v30, -inf }
 0x3b0   : > { %1067 = vmax.xlane.f32.xlu1 %v1066_v32 }
 0x3b2   : > { %v1056_v33 = vpop.f32.mrb[4].mxu0 }
 0x3b3   : > { %v2430_v34 = vpop.f32.mrb[5].mxu0  ;;  %v1069_v35 = vsel %vm771_vm2, %v1056_v33, -inf }
 0x3b4   : > { %1070 = vmax.xlane.f32.xlu1 %v1069_v35 }
 0x3c2   : > { %1104 = vrot.lane.b32.xlu0 %v621_v11, %s2864_s29 }
 0x3c5   : > { %1106 = vrot.lane.b32.xlu1 %v626_v13, %s2864_s29 }
 0x3c6   : > { %1110 = vrot.lane.b32.xlu0 %v630_v14, %s2864_s29 }
 0x3c9   : > { %1108 = vrot.lane.b32.xlu1 %v628_v15, %s2864_s29  ;;  %s3400_s29 = sld [smem:[#allocation21_spill]] }
 0x3f3   : > { %v1062_v36 = vpop.xlane.xlu1 %1061 }
 0x3f4   : > { %v1072_v37 = vsub.f32 %v840_v24, %v1062_v36  ;;  %v2865_v24 = vmov 1983009808  }
 0x3f5   : > { %v1679_v25 = vunpack.c.l.s4 %v2865_v24 }
 0x3f6   : > { %v1076_v38 = vmul.f32 1.442695, %v1072_v37 }
 0x3f7   : > { %v1680_v29 = vunpack.c.0.s8 %v1679_v25  ;;  %v1860_v25 = vld [vmem:[#allocation7] sm:$0xff] }
 0x3f8   : > { %2605 = vpow2.f32 %v1076_v38 }
 0x402   : > { %v2606_v39 = vpop.eup %2605 }
 0x403   : > { %v1084_v40 = vsel %vm771_vm2, %v2606_v39, 0.0 }
 0x404   : > { %1085 = vadd.xlane.f32.xlu1 %v1084_v40 }
 0x439   : > { %v1065_v41 = vpop.xlane.xlu0 %1064 }
 0x43a   : > { %v1073_v42 = vsub.f32 %v912_v27, %v1065_v41  ;;  %v2866_v27 = vmov 1934713408  }
 0x43b   : > { %v1711_v28 = vunpack.c.l.s4 %v2866_v27 }
 0x43c   : > { %v1078_v43 = vmul.f32 1.442695, %v1073_v42 }
 0x43d   : > { %v1068_v44 = vpop.xlane.xlu1 %1067  ;;  %v1105_v57 = vpop.permute.xlu0 %1104 }
 0x43e   : > { %2607 = vpow2.f32 %v1078_v43  ;;  %v1074_v45 = vsub.f32 %v984_v30, %v1068_v44  ;;  %v1682_v30 = vshrl.u32 %v1681_v26, 7  ;;  %v1861_v26 = vld [vmem:[#allocation7 + $0x8] sm:$0xff] }
 0x43f   : > { %v2491_v27 = vpack.c.bf16 %v1861_v26, %v1860_v25 }
 0x440   : > { %v1080_v46 = vmul.f32 1.442695, %v1074_v45  ;;  %v1683_v34 = vsub.s32 %v1680_v29, %v1682_v30  ;;  %v1863_v29 = vld [vmem:[#allocation7 + $0x18] sm:$0xff] }
 0x441   : > { %v1071_v47 = vpop.xlane.xlu1 %1070  ;;  %v1111_v59 = vpop.permute.xlu0 %1110 }
 0x442   : > { %2609 = vpow2.f32 %v1080_v46  ;;  %v1075_v48 = vsub.f32 %v1056_v33, %v1071_v47  ;;  %v1712_v33 = vunpack.c.0.s8 %v1711_v28  ;;  %v1862_v28 = vld [vmem:[#allocation7 + $0x10] sm:$0xff] }
 0x444   : > { %v1082_v49 = vmul.f32 1.442695, %v1075_v48  ;;  %v1715_v40 = vsub.s32 %v1712_v33, %v1682_v30  ;;  %v2494_v30 = vpack.c.bf16 %v1863_v29, %v1862_v28 }
 0x445   : > { %v1107_v56 = vpop.permute.xlu1 %1106 }
 0x446   : > { %2611 = vpow2.f32 %v1082_v49 }
 0x448   : > { %v2608_v50 = vpop.eup %2607 }
 0x449   : > { %v1087_v51 = vsel %vm771_vm2, %v2608_v50, 0.0  ;;  %v1109_v58 = vpop.permute.xlu1 %1108 }
 0x44a   : > { %1088 = vadd.xlane.f32.xlu0 %v1087_v51 }
 0x44c   : > { %v2610_v52 = vpop.eup %2609 }
 0x44d   : > { %v1090_v53 = vsel %vm771_vm2, %v2610_v52, 0.0 }
 0x44e   : > { %1091 = vadd.xlane.f32.xlu0 %v1090_v53 }
 0x450   : > { %v2612_v54 = vpop.eup %2611 }
 0x451   : > { %v1093_v55 = vsel %vm771_vm2, %v2612_v54, 0.0 }
 0x452   : > { %1094 = vadd.xlane.f32.xlu1 %v1093_v55 }
 0x47b   : > { %1116 = vxpose.xlu0.b32.start.end [1/1] (short) (narrow) %v1105_v57, 8 }
 0x47f   : > { %1180 = vxpose.xlu0.b32.start.end [1/1] (short) (narrow) %v1109_v58, 8 }
 0x483   : > { %1212 = vxpose.xlu0.b32.start.end [1/1] (short) (narrow) %v1111_v59, 8 }
 0x485   : > { %1148 = vxpose.xlu1.b32.start.end [1/1] (short) (narrow) %v1107_v56, 8 }
 0x491   : > { %v1086_v60 = vpop.xlane.xlu1 %1085 }
 0x492   : > { %2613 = vrcp.f32 %v1086_v60 }
 0x49c   : > { %v2614_v61 = vpop.eup %2613 }
 0x49d   : > { %v1100_v62 = vmul.f32 %v2614_v61, %v2606_v39 }
 0x49f   : > { %2432 = vmatpush3.xpose.msk.msra.mxu1 %vm771_vm2, %v1100_v62 }
 0x4a0   : > { %2441 = vmatprep.subr.mxu1 %v2859_v1 }
 0x4d7   : > { %v1089_v63 = vpop.xlane.xlu0 %1088 }
 0x4d8   : > { %2615 = vrcp.f32 %v1089_v63 }
 0x4db   : > { %v1092_v4 = vpop.xlane.xlu0 %1091 }
 0x4dc   : > { %2617 = vrcp.f32 %v1092_v4 }
 0x4df   : > { %v1095_v5 = vpop.xlane.xlu1 %1094 }
 0x4e0   : > { %2619 = vrcp.f32 %v1095_v5 }
 0x4e2   : > { %v2616_v2 = vpop.eup %2615 }
 0x4e3   : > { %v1101_v3 = vmul.f32 %v2616_v2, %v2608_v50 }
 0x4e5   : > { %2437 = vmatpush3.xpose.msk.msra.mxu0 %vm771_vm2, %v1101_v3 }
 0x4e6   : > { %2446 = vmatprep.subr.mxu0 %v2859_v1  ;;  %v2618_v6 = vpop.eup %2617 }
 0x4e7   : > { %v1102_v7 = vmul.f32 %v2618_v6, %v2610_v52 }
 0x4ea   : > { %v2620_v11 = vpop.eup %2619 }
 0x4eb   : > { %v1103_v12 = vmul.f32 %v2620_v11, %v2612_v54 }
 0x4fb   : > { %v1132_v9 = vpop.trf.xlu0 }
 0x4fc   : > { %2434 = vmatmul.mubr.msk.f32.vlgmr.msra.gmra.mrb[4].mxu1 %vm771_vm2, %v1132_v9 }
 0x4fd   : > { %2442 = vmatpush3.xpose.msk.msra.mxu1 %vm771_vm2, %v1102_v7  ;;  %2443 = vmatprep.mubr.msk.f32.mxu1 %vm2858_vm0, %v2859_v1 }
 0x4fe   : > { %2490 = vmatprep.subr.bf16.mxu1 %v2857_v0 }
 0x4ff   : > { %v1196_v10 = vpop.trf.xlu0 }
 0x500   : > { %2444 = vmatmul.mubr.msk.f32.vlgmr.msra.gmra.mrb[6].mxu1 %vm771_vm2, %v1196_v10 }
 0x501   : > { %2459 = vmatprep.mubr.msk.f32.mxu1 %vm2858_vm0, %v2859_v1  ;;  %2492 = vmatpush3.bf16.msra.mxu1 %v2491_v27 }
 0x502   : > { %2493 = vmatprep.subr.bf16.mxu1 %v2857_v0 }
 0x503   : > { %v1228_v14 = vpop.trf.xlu0 }
 0x505   : > { %v1164_v13 = vpop.trf.xlu1  ;;  %2495 = vmatpush3.bf16.msra.mxu1 %v2494_v30 }
 0x506   : > { %2439 = vmatmul.mubr.msk.f32.vlgmr.msra.gmra.mrb[6].mxu0 %vm771_vm2, %v1164_v13  ;;  %2502 = vmatprep.subr.bf16.mxu1 %v2857_v0 }
 0x507   : > { %2447 = vmatpush3.xpose.msk.msra.mxu0 %vm771_vm2, %v1103_v12  ;;  %2448 = vmatprep.mubr.msk.f32.mxu0 %vm2858_vm0, %v2859_v1 }
 0x508   : > { %2496 = vmatprep.subr.bf16.mxu0 %v2857_v0 }
 0x50a   : > { %2449 = vmatmul.mubr.msk.f32.vlgmr.msra.gmra.mrb[8].mxu0 %vm771_vm2, %v1228_v14 }
 0x50b   : > { %2470 = vmatprep.mubr.msk.f32.mxu0 %vm2858_vm0, %v2859_v1 }
 0x5cf   : > { %v1316_v15 = vpop.f32.mrb[4].mxu1 }
 0x5d0   : > { %v2435_v16 = vpop.f32.mrb[5].mxu1  ;;  %1548 = vxpose.xlu1.b32.start.end [1/1] (short) (narrow) %v1316_v15, 8 }
 0x5d3   : > { %v1468_v17 = vpop.f32.mrb[6].mxu1 }
 0x5d4   : > { %v2445_v18 = vpop.f32.mrb[7].mxu1  ;;  %1612 = vxpose.xlu1.b32.start.end [1/1] (short) (narrow) %v1468_v17, 8 }
 0x5d9   : > { %v1392_v19 = vpop.f32.mrb[6].mxu0 }
 0x5da   : > { %1580 = vxpose.xlu0.b32.start.end [1/1] (short) (narrow) %v1392_v19, 8  ;;  %v2440_v20 = vpop.f32.mrb[7].mxu0 }
 0x5dd   : > { %v1544_v21 = vpop.f32.mrb[8].mxu0 }
 0x5de   : > { %1644 = vxpose.xlu0.b32.start.end [1/1] (short) (narrow) %v1544_v21, 8  ;;  %v2450_v22 = vpop.f32.mrb[9].mxu0 }
 0x650   : > { %v1564_v23 = vpop.trf.xlu1 }
 0x654   : > { %v1628_v32 = vpop.trf.xlu1 }
 0x655   : > { %v1676_v35 = vcombine.low %v1564_v23, %v1628_v32  ;;  %v1677_v36 = vcombine.high %v1564_v23, %v1628_v32 }
 0x657   : > { %v1684_v41 = vrot.slane %v1676_v35, %v1683_v34  ;;  %v1691_v42 = vrot.slane %v1677_v36, %v1683_v34 }
 0x65a   : > { %v1596_v31 = vpop.trf.xlu0 }
 0x65e   : > { %v1660_v37 = vpop.trf.xlu0 }
 0x65f   : > { %v1692_v38 = vcombine.low %v1596_v31, %v1660_v37  ;;  %v1693_v39 = vcombine.high %v1596_v31, %v1660_v37  ;;  %v1946_v31 = vld [vmem:[#allocation8 + $0x8] sm:$0xff]  ;;  %v2348_v37 = vld [vmem:[%s3355_s3] ss:$0 sm:$0xff] }
 0x661   : > { %v1700_v43 = vrot.slane %v1692_v38, %v1683_v34  ;;  %v1707_v44 = vrot.slane %v1693_v39, %v1683_v34  ;;  %v2349_v39 = vld [vmem:[%s3356_s4] ss:$0 sm:$0xff] }
 0x663   : > { %v1708_v45 = vcombine.low %v1684_v41, %v1700_v43  ;;  %v1709_v46 = vcombine.high %v1684_v41, %v1700_v43  ;;  %v1724_v47 = vcombine.low %v1691_v42, %v1707_v44  ;;  %v1725_v48 = vcombine.high %v1691_v42, %v1707_v44  ;;  %v1947_v42 = vld [vmem:[#allocation8 + $0x10] sm:$0xff]  ;;  %v1948_v43 = vld [vmem:[#allocation8 + $0x18] sm:$0xff] }
 0x664   : > { %v2500_v44 = vpack.c.bf16 %v1948_v43, %v1947_v42 }
 0x665   : > { %v1716_v49 = vrot.slane %v1708_v45, %v1715_v40  ;;  %v1723_v50 = vrot.slane %v1709_v46, %v1715_v40  ;;  %v1732_v51 = vrot.slane %v1724_v47, %v1715_v40  ;;  %v1739_v52 = vrot.slane %v1725_v48, %v1715_v40  ;;  %v2350_v45 = vld [vmem:[%s3358_s6] ss:$0 sm:$0xff] }
 0x667   : > { %v1744_v53 = vcombine.low %v1716_v49, %v1723_v50  ;;  %v2346_v54 = vcombine.high %v1716_v49, %v1723_v50  ;;  %v1760_v55 = vcombine.low %v1732_v51, %v1739_v52  ;;  %v2347_v56 = vcombine.high %v1732_v51, %v1739_v52  ;;  %v2352_v50 = vld [vmem:[%s3360_s8] ss:$0 sm:$0xff] }
 0x669   : > { %v1751_v57 = vrot.slane %v1744_v53, %v1683_v34  ;;  %v1759_v58 = vrot.slane %v2346_v54, %v1683_v34  ;;  %v1767_v59 = vrot.slane %v1760_v55, %v1683_v34  ;;  %v1775_v60 = vrot.slane %v2347_v56, %v1683_v34 }
 0x66b   : > { %v1777_v61 = vcombine.high %v1751_v57, %v1759_v58  ;;  %v1793_v62 = vcombine.high %v1767_v59, %v1775_v60  ;;  %v1776_v63 = vcombine.low %v1751_v57, %v1759_v58  ;;  %v1792_v2 = vcombine.low %v1767_v59, %v1775_v60 }
 0x66d   : > { %v1791_v3 = vrot.slane %v1777_v61, %v1715_v40  ;;  %v1807_v4 = vrot.slane %v1793_v62, %v1715_v40  ;;  %v1784_v5 = vrot.slane %v1776_v63, %v1715_v40  ;;  %v1800_v6 = vrot.slane %v1792_v2, %v1715_v40 }
 0x66f   : > { %v1810_v7 = vcombine.low %v1791_v3, %v1807_v4  ;;  %v1809_v9 = vcombine.high %v1784_v5, %v1800_v6  ;;  %v1808_v10 = vcombine.low %v1784_v5, %v1800_v6  ;;  %v1811_v11 = vcombine.high %v1791_v3, %v1807_v4 }
 0x671   : > { %1817 = vrot.lane.b32.xlu0 %v1810_v7, %s2867_s18  ;;  %1813 = vrot.lane.b32.xlu1 %v1809_v9, %s2868_s20  ;;  %s3398_s18 = sld [smem:[#allocation22_spill]]  ;;  %v2354_v9 = vld [vmem:[%s3399_s14] ss:$0 sm:$0xff]  ;;  %s530_s20 = scalar_lea.vmem [#allocation10], %s3149_s10 }
 0x672   : > { %s3282_s14 = scalar_lea.hbm %s3402_s25, %s3375_s28  ;;  %s2173_s23 = sshll.u32 %s530_s20, 4  ;;  %s2174_s23 = int_to_ptr.vmem [resolvable:$true] %s2173_s23 }
 0x675   : > { %1821 = vrot.lane.b32.xlu1 %v1811_v11, %s2869_s27  ;;  %v2355_v11 = vld [vmem:[%s3400_s29] ss:$0 sm:$0xff]  ;;  %s2743_s29 = scalar_lea.vmem %s2174_s23, 128  ;;  %s2870_s27 = smov [#allocation10]  }
 0x676   : > { %p2744_p10 = scmp.ne.s32.totalorder %s2174_s23, %s2743_s29  ;;  %s2747_s24 = sshll.u32 %s2870_s27, 4  ;;  %s2748_s24 = int_to_ptr.vmem [resolvable:$false] %s2747_s24 }
 0x677   : > { %v2059_v60 = vld [vmem:[%s3398_s18] sm:$0xff]  ;;  %v2060_v61 = vld [vmem:[%s3398_s18 + $0x8] sm:$0xff]  ;;  %v2061_v63 = vld [vmem:[%s3398_s18 + $0x10] sm:$0xff]  ;;  %p2750_p12 = scmp.lt.s32.totalorder %s2174_s23, %s2748_s24 }
 0x678   : > { %v2503_v62 = vpack.c.bf16 %v2060_v61, %v2059_v60  ;;  %v2062_v2 = vld [vmem:[%s3398_s18 + $0x18] sm:$0xff]  ;;  %p2745_p3 = pnand %p2744_p10, %p3101_p5 }
 0x679   : > { %v2506_v3 = vpack.c.bf16 %v2062_v2, %v2061_v63 }
 0x67a   : > { %p2746_p7 = pneg %p2745_p3 }
 0x6e3   : > { %v1814_v12 = vpop.permute.xlu1 %1813  ;;  %v1818_v13 = vpop.permute.xlu0 %1817 }
 0x6e4   : > { %v1824_v14 = vsel %vm771_vm2, %v1808_v10, %v1814_v12 }
 0x6e5   : > { %v1826_v16 = vsel %vm1825_vm3, %v1824_v14, %v1818_v13 }
 0x6e7   : > { %v1822_v15 = vpop.permute.xlu1 %1821 }
 0x6e8   : > { %v1828_v17 = vsel %vm1827_vm4, %v1826_v16, %v1822_v15 }
 0x6e9   : > { %v1829_v18 = vadd.f32 %v1828_v17, %v3172_v8  ;;  %v1945_v8 = vld [vmem:[#allocation8] sm:$0xff] }
 0x6ea   : > { %v2497_v32 = vpack.c.bf16 %v1946_v31, %v1945_v8 }
 0x6eb   : > { %v1832_v19 = vsel %vm550_vm1, %v1829_v18, 0.0 }
 0x6ec   : > { %1833 = vadd.xlane.f32.xlu1 %v1832_v19  ;;  %2498 = vmatpush3.bf16.msra.mxu0 %v2497_v32 }
 0x6ed   : > { %2499 = vmatprep.subr.bf16.mxu0 %v2857_v0 }
 0x6f0   : > { %2501 = vmatpush3.bf16.msra.mxu0 %v2500_v44 }
 0x779   : > { %v1834_v20 = vpop.xlane.xlu1 %1833 }
 0x77a   : > { %v1836_v21 = vmul.f32 0.03125, %v1834_v20 }
 0x77c   : > { %v1837_v22 = vsub.f32 %v1829_v18, %v1836_v21 }
 0x77e   : > { %v1838_v23 = vmul.f32 %v1837_v22, %v1837_v22 }
 0x780   : > { %v1839_v24 = vsel %vm550_vm1, %v1838_v23, 0.0 }
 0x781   : > { %1840 = vadd.xlane.f32.xlu0 %v1839_v24 }
 0x80e   : > { %v1841_v33 = vpop.xlane.xlu0 %1840 }
 0x80f   : > { %v1842_v34 = vmul.f32 0.03125, %v1841_v33 }
 0x811   : > { %v1843_v35 = vadd.f32 1e-05, %v1842_v34 }
 0x813   : > { %2621 = vrsqrt.f32 %v1843_v35 }
 0x81d   : > { %v2622_v36 = vpop.eup %2621 }
 0x81e   : > { %v1845_v38 = vmul.f32 %v2622_v36, %v1837_v22 }
 0x820   : > { %v1852_v40 = vmul.f32 %v2348_v37, %v1845_v38 }
 0x822   : > { %v1859_v41 = vadd.f32 %v2349_v39, %v1852_v40 }
 0x824   : > { %2460 = vmatmul.mubr.msk.f32.vlgmr.msra.gmra.mrb[8].mxu1 %vm550_vm1, %v1859_v41 }
 0x825   : > { %2481 = vmatprep.mubr.msk.f32.mxu1 %vm2858_vm0, %v2859_v1  ;;  %2504 = vmatpush3.bf16.msra.mxu1 %v2503_v62 }
 0x826   : > { %2505 = vmatprep.subr.bf16.mxu1 %v2857_v0  ;;  %v2356_v0 = vld [vmem:[%s3401_s22] ss:$0 sm:$0xff]  ;;  %s2749_s22 = scalar_lea.vmem %s2748_s24, 256 }
 0x827   : > { %p2751_p1 = scmp.lt.s32.totalorder %s2749_s22, %s2743_s29 }
 0x829   : > { %2507 = vmatpush3.bf16.msra.mxu1 %v2506_v3  ;;  %p2752_p2 = por %p2751_p1, %p2750_p12 }
 0x82b   : > { %p2753_p4 = pnand %p2752_p2, %p2746_p7 }
 0x8f7   : > { %v1940_v46 = vpop.f32.mrb[8].mxu1 }
 0x8f8   : > { %v1941_v47 = vadd.f32 %v2350_v45, %v1940_v46  ;;  %v2461_v48 = vpop.f32.mrb[9].mxu1 }
 0x8fa   : > { %v1944_v49 = vmax.f32 %v1941_v47, 0.0 }
 0x8fc   : > { %2471 = vmatmul.mubr.msk.f32.vlgmr.msra.gmra.mrb[10].mxu0 %vm550_vm1, %v1944_v49 }
 0x9cf   : > { %v2025_v51 = vpop.f32.mrb[10].mxu0 }
 0x9d0   : > { %v2026_v1 = vadd.f32 %v2352_v50, %v2025_v51  ;;  %v2472_v52 = vpop.f32.mrb[11].mxu0 }
 0x9d2   : > { %v2029_v53 = vadd.f32 %v2026_v1, %v1859_v41 }
 0x9d4   : > { %v2032_v54 = vsel %vm550_vm1, %v2029_v53, 0.0 }
 0x9d5   : > { %2033 = vadd.xlane.f32.xlu1 %v2032_v54 }
 0xa62   : > { %v2034_v55 = vpop.xlane.xlu1 %2033 }
 0xa63   : > { %v2035_v56 = vmul.f32 0.03125, %v2034_v55 }
 0xa65   : > { %v2036_v57 = vsub.f32 %v2029_v53, %v2035_v56 }
 0xa67   : > { %v2037_v58 = vmul.f32 %v2036_v57, %v2036_v57 }
 0xa69   : > { %v2038_v59 = vsel %vm550_vm1, %v2037_v58, 0.0 }
 0xa6a   : > { %2039 = vadd.xlane.f32.xlu0 %v2038_v59 }
 0xaf7   : > { %v2040_v4 = vpop.xlane.xlu0 %2039 }
 0xaf8   : > { %v2041_v5 = vmul.f32 0.03125, %v2040_v4 }
 0xafa   : > { %v2042_v6 = vadd.f32 1e-05, %v2041_v5 }
 0xafc   : > { %2623 = vrsqrt.f32 %v2042_v6 }
 0xb06   : > { %v2624_v7 = vpop.eup %2623 }
 0xb07   : > { %v2044_v10 = vmul.f32 %v2624_v7, %v2036_v57 }
 0xb09   : > { %v2051_v12 = vmul.f32 %v2354_v9, %v2044_v10 }
 0xb0b   : > { %v2058_v13 = vadd.f32 %v2355_v11, %v2051_v12 }
 0xb0d   : > { %2482 = vmatmul.mubr.msk.f32.vlgmr.msra.gmra.mrb[10].mxu1 %vm550_vm1, %v2058_v13  ;;  %2152 = vst.msk [vmem:[%s530_s20] sm:$0xff] %vm550_vm1, %v2058_v13 }
 0xbe0   : > { %v2139_v14 = vpop.f32.mrb[10].mxu1 }
 0xbe1   : > { %v2140_v15 = vadd.f32 %v2356_v0, %v2139_v14  ;;  %v2483_v16 = vpop.f32.mrb[11].mxu1 }
 0xbe3   : > { %2143 = vmax.xlane.f32.xlu1 %v2140_v15 }
 0xc70   : > { %v2144_v17 = vpop.xlane.xlu1 %2143 }
 0xc71   : > { %v2145_v18 = vsub.f32 %v2140_v15, %v2144_v17 }
 0xc73   : > { %v2146_v19 = vmul.f32 1.442695, %v2145_v18 }
 0xc75   : > { %2625 = vpow2.f32 %v2146_v19 }
 0xc7f   : > { %v2626_v20 = vpop.eup %2625 }
 0xc80   : > { %2148 = vadd.xlane.f32.xlu0 %v2626_v20 }
 0xc81   : > { %2756 = shalt.err (!%p2753_p4)
}
 0xc82   : > { %s2757_s20 = scalar_lea.hbm %s3282_s14, 128  ;;  %s2761_s27 = scalar_lea.hbm %s3402_s25, 256 }
 0xc83   : > { %p2758_p0 = scmp.ne.s32.totalorder %s3282_s14, %s2757_s20  ;;  %p2762_p8 = scmp.lt.u32.totalorder %s3282_s14, %s3402_s25 }
 0xc84   : > { %p2763_p13 = scmp.lt.u32.totalorder %s2761_s27, %s2757_s20  ;;  %p2765_p10 = scmp.lt.u32.totalorder %s2757_s20, %s3282_s14 }
 0xc85   : > { %p2759_p9 = pnand %p2758_p0, %p3101_p5 }
 0xc86   : > { %p2764_p6 = por %p2763_p13, %p2762_p8 }
 0xc87   : > { %p2760_p11 = pneg %p2759_p9 }
 0xc88   : > { %p2766_p3 = por %p2765_p10, %p2764_p6 }
 0xc8a   : > { %p2767_p7 = pnand %p2766_p3, %p2760_p11 }
 0xc8c   : > { %2770 = shalt.err (!%p2767_p7)
}
 0xc8d   : > { %2522 = dma.vmem_to_hbm [thread:$0]  (%p3101_p5), %s2174_s23, 128, %s3282_s14, %s2155_s26  }
 0xc8e   : > { %s537_s29 = scalar_lea.vmem [#allocation11], %s3149_s10  ;;  %s3403_s28 = sshll.u32 %s2968_s17, 7 }
 0xc8f   : > { %s2186_s22 = sshll.u32 %s537_s29, 4  ;;  %s3404_s21 = sld [smem:[#allocation25_spill]]  ;;  %s3310_s22 = int_to_ptr.vmem [resolvable:$true] %s2186_s22 }
 0xc90   : > { %s2160_s24 = scalar_lea.sflag [#allocation12], %s3146_s9  ;;  %s2771_s14 = scalar_lea.vmem %s3310_s22, 128 }
 0xc91   : > { %p2772_p12 = scmp.ne.s32.totalorder %s3310_s22, %s2771_s14  ;;  %s2871_s10 = smov [#allocation11]  }
 0xc92   : > { %s2775_s23 = sshll.u32 %s2871_s10, 4  ;;  %s2776_s23 = int_to_ptr.vmem [resolvable:$false] %s2775_s23 }
 0xc93   : > { %p2773_p1 = pnand %p2772_p12, %p3101_p5  ;;  %s2777_s17 = scalar_lea.vmem %s2776_s23, 256 }
 0xc94   : > { %p2778_p4 = scmp.lt.s32.totalorder %s3310_s22, %s2776_s23  ;;  %p2779_p0 = scmp.lt.s32.totalorder %s2777_s17, %s2771_s14 }
 0xc95   : > { %s3308_s27 = scalar_lea.hbm %s3404_s21, %s3403_s28  ;;  %p2774_p2 = pneg %p2773_p1 }
 0xc96   : > { %p2780_p9 = por %p2779_p0, %p2778_p4 }
 0xc98   : > { %p2781_p11 = pnand %p2780_p9, %p2774_p2 }
 0xd0d   : > { %v2149_v21 = vpop.xlane.xlu0 %2148 }
 0xd0e   : > { %2627 = vrcp.f32 %v2149_v21 }
 0xd18   : > { %v2628_v22 = vpop.eup %2627 }
 0xd19   : > { %v2151_v23 = vmul.f32 %v2628_v22, %v2626_v20 }
 0xd1b   : > { %2153 = vst [vmem:[%s537_s29] sm:$0xff] %v2151_v23 }
 0xd1c   : > { %2784 = shalt.err (!%p2781_p11)
}
 0xd1d   : > { %s2785_s9 = scalar_lea.hbm %s3308_s27, 128  ;;  %s2789_s28 = scalar_lea.hbm %s3404_s21, 256 }
 0xd1e   : > { %p2786_p8 = scmp.ne.s32.totalorder %s3308_s27, %s2785_s9  ;;  %p2790_p10 = scmp.lt.u32.totalorder %s3308_s27, %s3404_s21 }
 0xd1f   : > { %p2791_p3 = scmp.lt.u32.totalorder %s2789_s28, %s2785_s9  ;;  %p2793_p12 = scmp.lt.u32.totalorder %s2785_s9, %s3308_s27 }
 0xd20   : > { %p2787_p13 = pnand %p2786_p8, %p3101_p5 }
 0xd21   : > { %p2792_p7 = por %p2791_p3, %p2790_p10 }
 0xd22   : > { %p2788_p6 = pneg %p2787_p13 }
 0xd23   : > { %p2794_p1 = por %p2793_p12, %p2792_p7 }
 0xd25   : > { %p2795_p2 = pnand %p2794_p1, %p2788_p6 }
 0xd27   : > { %2798 = shalt.err (!%p2795_p2)
}
 0xd28   : > { %2523 = dma.vmem_to_hbm [thread:$0]  (%p3101_p5), %s3310_s22, 128, %s3308_s27, %s2160_s24  }
 0xd29 PF: > { %s3405_s14 = sld [smem:[#allocation18_spill]]  ;;  %s3406_s10 = sld [smem:[#allocation19_spill]] }
 0xd2a   : > { %p3408_p0 = scmp.ge.s32.totalorder %s2849_s16, 2 }
 0xd2f   : > { %s2198_s23 = sand.u32 1, %s3405_s14   ;;  %p3407_p4 = scmp.ne.s32.totalorder %s3406_s10, 0 }
 0xd30   : > { %s2199_s17 = scalar_lea.sflag [#allocation4], %s2198_s23 }
 0xd31   : > { %p2541_p9 = pnand %p3408_p0, %p3407_p4 }
 0xd33   : > { %2828 = dma.done.wait (!%p2541_p9), %s2199_s17, 128  }
 0xd34   : > { %2830 = vsyncadd (!%p2541_p9), %s2199_s17, 4294967168  ;;  %s2208_s9 = scalar_lea.sflag [#allocation12], %s2198_s23 }
 0xd35   : > { %2832 = dma.done.wait (!%p2541_p9), %s2208_s9, 128  }
 0xd36   : > { %2834 = vsyncadd (!%p2541_p9), %s2208_s9, 4294967168  ;;  %p33_p5 = scmp.ge.s32.totalorder %s3087_s13, 4   ;;  %s3409_s29 = smov %s2841_s30 }
 0xd37   : > { %s3410_s30 = smov %s2845_s15  ;;  %s3411_s15 = smov %s3097_s11 }
 0xd38   : > { %s3412_s16 = smov %s3087_s13  ;;  %35 = sbr.rel (!%p33_p5) target bundleno = 16 (0x10), region = 146 }
 0xd3f   :  { %2213 = vsyncpa [#allocation3], 1 }
 0xd40   :  { %2215 = vsyncpa [#allocation3 + $0x1], 1 }
 0xd41   :  { %2216 = vsyncpa [#allocation6], 1 }
 0xd42   :  { %2217 = vsyncpa [#allocation9], 1 }
 0xd43   :  { %2218 = vsyncpa [#allocation4], 1 }
 0xd44   :  { %2220 = vsyncpa [#allocation4 + $0x1], 1 }
 0xd45   :  { %2221 = vsyncpa [#allocation12], 1 }
 0xd46   :  { %2223 = vsyncpa [#allocation12 + $0x1], 1 }

</bundles_post_ra>
